<compile_context>
chip_gen: v7x
topology: tpu7x:2x2x1
jax: 0.10.0
libtpu: 0.0.40
codegen_flags: <defaults>
</compile_context>

<pallas_src>
import functools

import jax
import jax.numpy as jnp
from jax.experimental import pallas as pl
from jax.experimental.pallas import tpu as pltpu

_SUBLANE = 8
_LANE = 128
_MIN_PALLAS_LANES = 32       # below this, <25% of each vreg lane is live -> XLA fallback
_TEMP_F32_TILES = 6          # VMEM budget for whole-tile f32 temporaries (x, z, exp, base, ...)
_MAX_TILE_ROWS = 32768       # sanity cap only; the 512-row cap from the old version is gone


def _round_up(a, b):
    return (a + b - 1) // b * b


@functools.lru_cache(maxsize=1)
def _tpu_budgets():
    """Returns (is_v7x, hbm_tile_target_bytes, vmem_tile_budget, vmem_limit_bytes)."""
    kind = ""
    try:
        dev = jax.devices()[0]
        if dev.platform == "tpu":
            kind = (getattr(dev, "device_kind", "") or "").lower()
    except Exception:
        pass
    is_v7 = ("v7" in kind) or ("7x" in kind)
    if is_v7:
        # v7x: only 64 MiB VMEM per TensorCore -> leave headroom for compiler scratch.
        return True, 5 * 2**20, 26 * 2**20, 44 * 2**20
    # v5e / v6e: 128 MiB physical VMEM (scoped defaults 16/32 MiB) -> ask for 64 MiB.
    return False, 8 * 2**20, 48 * 2**20, 64 * 2**20


def _choose_tile_n(n, c, itemsize, hbm_target, vmem_budget):
    """Batch-tile rows: multiple of 8, sized for HBM streaming and the VMEM budget."""
    lane_c = max(_LANE, _round_up(c, _LANE))                  # lane-padded class width in VMEM
    hbm_row = max(1, c * itemsize)                            # bytes actually streamed per row
    vmem_row = lane_c * (2 * itemsize + _TEMP_F32_TILES * 4)  # dbl-buffered input + f32 temps
    tn = min(hbm_target // hbm_row, vmem_budget // vmem_row, _MAX_TILE_ROWS)
    tn = max(_SUBLANE, (int(tn) // _SUBLANE) * _SUBLANE)
    return min(tn, max(_SUBLANE, _round_up(n, _SUBLANE)))


def _sumsq(n):
    """sum_{k=1..n} k^2 (works on floats and traced arrays)."""
    return n * (n + 1.0) * (2.0 * n + 1.0) / 6.0


def _make_kernel(num_classes, smoothing, mode, tile_n, n_valid, tiles_per_split):
    C = num_classes
    s = float(smoothing)

    def kernel(x_ref, tgt_ref, out_ref, acc_ref):
        split = pl.program_id(0)
        step = pl.program_id(1)

        @pl.when(step == 0)
        def _init():
            acc_ref[...] = jnp.zeros_like(acc_ref)

        x = x_ref[...].astype(jnp.float32)       # (tile_n, C) logits, single in-kernel upcast
        tgt = tgt_ref[...]                       # (tile_n, 1) int32 labels

        # numerically stable log-softmax pieces (per row)
        m = jnp.max(x, axis=-1, keepdims=True)
        z = x - m
        lse = jnp.log(jnp.sum(jnp.exp(z), axis=-1, keepdims=True))    # (tile_n, 1)

        j = jax.lax.broadcasted_iota(jnp.int32, (tile_n, C), 1)
        d = j - tgt                                                   # signed class distance
        z_t = jnp.sum(jnp.where(d == 0, z, 0.0), axis=-1, keepdims=True)  # z at the target class

        if mode is None:
            # -sum_c q_c*logp_c == (1-s)*(lse - z_t) + (s/C)*(C*lse - sum_c z_c)
            z_sum = jnp.sum(z, axis=-1, keepdims=True)
            loss_row = (1.0 - s) * (lse - z_t) + (s / C) * (C * lse - z_sum)
        else:
            # W_c ~ ((1-s)*onehot_c + s/C) * base_c  (normalized per row), base_c=(C-|c-t|)^p.
            # sum_c W_c == 1  =>  sum_c -logp_c*W_c == lse - num/den with
            #   num = (s/C)*sum_c base_c*z_c + (1-s)*C^p*z_t
            #   den = (s/C)*S_base(t)        + (1-s)*C^p        (S_base in closed form)
            base = jnp.float32(C) - jnp.abs(d).astype(jnp.float32)
            if mode == "quadratic":
                base = base * base
            a_sum = jnp.sum(base * z, axis=-1, keepdims=True)
            t = tgt.astype(jnp.float32)
            if mode == "linear":
                cp = float(C)
                s_base = (float(C * C)
                          - 0.5 * t * (t + 1.0)
                          - 0.5 * (C - 1.0 - t) * (C - t))
            else:
                cp = float(C) * float(C)
                tc = float(_sumsq(float(C)))
                s_base = 2.0 * tc - _sumsq(C - 1.0 - t) - _sumsq(t) - float(C * C)
            num = (s / C) * a_sum + (1.0 - s) * cp * z_t
            den = (s / C) * s_base + (1.0 - s) * cp
            # NOTE: exact division on purpose; approx reciprocal is visible at 2e-5 atol.
            loss_row = lse - num / den

        # Mask rows past the true batch size: covers the ragged final block (no
        # wrapper-side pad of x) and any clamped overrun blocks on the split axis.
        row = jax.lax.broadcasted_iota(jnp.int32, (tile_n, 1), 0)
        global_row = (split * tiles_per_split + step) * tile_n + row
        acc_ref[...] += jnp.where(global_row < n_valid, loss_row, 0.0)

        @pl.when(step == pl.num_programs(1) - 1)
        def _finalize():
            partial = jnp.sum(acc_ref[...], axis=0, keepdims=True)    # (1, 1)
            out_ref[...] = jnp.broadcast_to(partial, out_ref.shape)

    return kernel


def _pallas_forward(x, target, weight, smoothing, tile_rows=None):
    N, C = x.shape
    is_v7, hbm_target, vmem_budget, vmem_limit = _tpu_budgets()

    if tile_rows is not None:
        tile_n = max(_SUBLANE, _round_up(int(tile_rows), _SUBLANE))
    else:
        tile_n = _choose_tile_n(N, C, x.dtype.itemsize, hbm_target, vmem_budget)
    num_tiles = pl.cdiv(N, tile_n)

    # Only the tiny label vector is padded (so every label block is in-bounds);
    # the logits are streamed un-padded - no extra HBM round trip.
    tgt = target.reshape(-1, 1).astype(jnp.int32)
    pad_rows = num_tiles * tile_n - N
    if pad_rows:
        tgt = jnp.pad(tgt, ((0, pad_rows), (0, 0)))

    def run(num_splits, dim_semantics):
        tiles_per_split = pl.cdiv(num_tiles, num_splits)
        if num_splits * tiles_per_split == num_tiles:
            def idx(sp, i):
                return sp * tiles_per_split + i
        else:
            # Splits may overrun the real tile count; clamp the block index (the
            # re-read block is fully masked by global_row >= N in the kernel).
            def idx(sp, i):
                return jnp.minimum(sp * tiles_per_split + i, num_tiles - 1)

        kernel = _make_kernel(C, smoothing, weight, tile_n, N, tiles_per_split)
        return pl.pallas_call(
            kernel,
            out_shape=jax.ShapeDtypeStruct((num_splits * _SUBLANE, _LANE), jnp.float32),
            grid=(num_splits, tiles_per_split),
            in_specs=[
                pl.BlockSpec((tile_n, C), lambda sp, i: (idx(sp, i), 0)),
                pl.BlockSpec((tile_n, 1), lambda sp, i: (idx(sp, i), 0)),
            ],
            out_specs=pl.BlockSpec((_SUBLANE, _LANE), lambda sp, i: (sp, 0)),
            scratch_shapes=[pltpu.VMEM((tile_n, 1), jnp.float32)],
            compiler_params=pltpu.CompilerParams(
                dimension_semantics=dim_semantics,
                vmem_limit_bytes=int(vmem_limit),
            ),
        )(x, tgt)

    attempts = []
    if is_v7 and num_tiles > 1:
        # Shard row tiles across both TensorCores of a v7x chip.
        attempts.append((2, (pltpu.CORE_PARALLEL, pltpu.ARBITRARY)))
    attempts.append((1, (pltpu.ARBITRARY, pltpu.ARBITRARY)))

    out = None
    last_err = None
    for num_splits, sem in attempts:
        try:
            out = run(num_splits, sem)
            break
        except Exception as err:     # per-generation fallback (e.g. CORE_PARALLEL rejected)
            last_err = err
    if out is None:
        raise last_err

    partials = out[::_SUBLANE, 0]               # one partial sum per split
    denom = N if weight is None else N * C
    return jnp.sum(partials) / denom


def _xla_forward(x, target, weight=None, smoothing=0.1):
    """Plain-XLA forward (also the reference used for checking)."""
    x = x.astype(jnp.float32)
    N, C = x.shape
    logprobs = jax.nn.log_softmax(x, axis=-1)
    onehot = jax.nn.one_hot(target, C, dtype=jnp.float32)
    q = (1.0 - smoothing) * onehot + smoothing / C
    if weight is None:
        return jnp.mean(-jnp.sum(q * logprobs, axis=-1))
    j = jnp.arange(C)[None, :]
    d = jnp.abs(j - target[:, None]).astype(jnp.float32)
    base = C - d
    if weight == "quadratic":
        base = base * base
    w = q * base
    w = w / jnp.sum(w, axis=-1, keepdims=True)
    return jnp.mean(-logprobs * w)


def label_smoothing_ce_weighted(x, target, weight=None, smoothing=0.1, *,
                                force_pallas=False, tile_rows=None):
    """JAX/Pallas equivalent of LabelSmoothingCrossEntropy_weighted.forward."""
    if weight not in (None, "linear", "quadratic"):
        raise ValueError(f"unsupported weight mode: {weight!r}")
    _, C = x.shape
    # Tiny class counts (e.g. the module default num_classes=4) leave >75% of every
    # vreg lane dead in the (N, C) lane layout; plain XLA is the better choice there.
    if C < _MIN_PALLAS_LANES and not force_pallas:
        return _xla_forward(x, target, weight, smoothing)
    return _pallas_forward(x, target, weight, smoothing, tile_rows=tile_rows)


if __name__ == "__main__":
    root = jax.random.PRNGKey(0)
    ok = True
    # (shape, dtype, force_pallas, tile_rows)
    configs = [
        ((64, 4), jnp.float32, True, None),     # module default num_classes=4, Pallas forced
        ((19, 7), jnp.float32, True, None),     # ragged single block + row masking
        ((76, 128), jnp.float32, True, 16),     # multi-step grid, accumulate + ragged tail
        ((64, 128), jnp.bfloat16, False, None), # lane-dense class axis, in-kernel bf16 upcast
        ((8, 4), jnp.float32, False, None),     # tiny-C default path (XLA fallback)
    ]
    for idx, ((N, C), dtype, force, trows) in enumerate(configs):
        kx, kt = jax.random.split(jax.random.fold_in(root, idx))
        x = jax.random.normal(kx, (N, C), dtype=dtype)
        target = jax.random.randint(kt, (N,), 0, C, dtype=jnp.int32)
        for mode in (None, "linear", "quadratic"):
            got = jax.block_until_ready(
                label_smoothing_ce_weighted(x, target, weight=mode, smoothing=0.1,
                                            force_pallas=force, tile_rows=trows))
            want = _xla_forward(x, target, weight=mode, smoothing=0.1)
            if not jnp.allclose(got, want, atol=2e-5, rtol=1e-4):
                ok = False
                print(f"MISMATCH N={N} C={C} dtype={jnp.dtype(dtype).name} "
                      f"mode={mode} force={force}: got={got}, want={want}")

    if ok:
        print("KERNEL_OK")
</pallas_src>

<mosaic_0001>
module attributes {stable_mosaic.version = 11 : i64} {
  func.func @kernel(%arg0: i32, %arg1: i32, %arg2: memref<64x4xf32, #tpu.memory_space<vmem>>, %arg3: memref<64x1xi32, #tpu.memory_space<vmem>>, %arg4: memref<8x128xf32, #tpu.memory_space<vmem>>, %arg5: memref<64x1xf32, #tpu.memory_space<vmem>>) attributes {dimension_semantics = [#tpu.dimension_semantics<arbitrary>, #tpu.dimension_semantics<arbitrary>], iteration_bounds = array<i64: 1, 1>, scalar_prefetch = 0 : i64, scratch_operands = 1 : i64, tpu.core_type = #tpu.core_type<tc>, window_params = [{transform_indices = @transform_0, window_bounds = array<i64: 64, 4>}, {transform_indices = @transform_1, window_bounds = array<i64: 64, 1>}, {transform_indices = @transform_2, window_bounds = array<i64: 8, 128>}]} {
    %c0_i32 = arith.constant 0 : i32
    %0 = arith.cmpi eq, %arg1, %c0_i32 : i32
    %1 = arith.extui %0 : i1 to i32
    %c0_i32_0 = arith.constant 0 : i32
    %2 = arith.cmpi ne, %1, %c0_i32_0 : i32
    scf.if %2 {
      %cst_20 = arith.constant 0.000000e+00 : f32
      %49 = vector.broadcast %cst_20 : f32 to vector<64x1xf32>
      %c0_21 = arith.constant 0 : index
      %c0_22 = arith.constant 0 : index
      %50 = vector.load %arg5[%c0_21, %c0_22] : memref<64x1xf32, #tpu.memory_space<vmem>>, vector<64x1xf32>
      tpu.vector_store %arg5[%c0_21, %c0_22], %49 {strides = array<i32>} : memref<64x1xf32, #tpu.memory_space<vmem>>, vector<64x1xf32>,
    } else {
    }
    %c0 = arith.constant 0 : index
    %c0_1 = arith.constant 0 : index
    %3 = vector.load %arg2[%c0, %c0_1] : memref<64x4xf32, #tpu.memory_space<vmem>>, vector<64x4xf32>
    %c0_2 = arith.constant 0 : index
    %c0_3 = arith.constant 0 : index
    %4 = vector.load %arg3[%c0_2, %c0_3] : memref<64x1xi32, #tpu.memory_space<vmem>>, vector<64x1xi32>
    %cst = arith.constant dense<0xFF800000> : vector<64xf32>
    %5 = vector.multi_reduction <maximumf>, %3, %cst [1] : vector<64x4xf32> to vector<64xf32>
    %6 = vector.shape_cast %5 : vector<64xf32> to vector<64x1xf32>
    %7 = vector.broadcast %6 : vector<64x1xf32> to vector<64x4xf32>
    %8 = arith.subf %3, %7 : vector<64x4xf32>
    %9 = math.exp %8 : vector<64x4xf32>
    %cst_4 = arith.constant dense<0.000000e+00> : vector<64xf32>
    %10 = vector.multi_reduction <add>, %9, %cst_4 [1] : vector<64x4xf32> to vector<64xf32>
    %11 = vector.shape_cast %10 : vector<64xf32> to vector<64x1xf32>
    %12 = math.log %11 : vector<64x1xf32>
    %13 = tpu.iota {dimensions = array<i32: 1>} : vector<64x4xi32>
    %14 = vector.broadcast %4 : vector<64x1xi32> to vector<64x4xi32>
    %15 = arith.subi %13, %14 : vector<64x4xi32>
    %c0_i32_5 = arith.constant 0 : i32
    %16 = vector.broadcast %c0_i32_5 : i32 to vector<64x4xi32>
    %17 = arith.cmpi eq, %15, %16 : vector<64x4xi32>
    %cst_6 = arith.constant 0.000000e+00 : f32
    %18 = vector.broadcast %cst_6 : f32 to vector<64x4xf32>
    %19 = arith.select %17, %8, %18 : vector<64x4xi1>, vector<64x4xf32>
    %cst_7 = arith.constant dense<0.000000e+00> : vector<64xf32>
    %20 = vector.multi_reduction <add>, %19, %cst_7 [1] : vector<64x4xf32> to vector<64xf32>
    %21 = vector.shape_cast %20 : vector<64xf32> to vector<64x1xf32>
    %cst_8 = arith.constant dense<0.000000e+00> : vector<64xf32>
    %22 = vector.multi_reduction <add>, %8, %cst_8 [1] : vector<64x4xf32> to vector<64xf32>
    %23 = vector.shape_cast %22 : vector<64xf32> to vector<64x1xf32>
    %24 = arith.subf %12, %21 : vector<64x1xf32>
    %cst_9 = arith.constant 0.899999976 : f32
    %25 = vector.broadcast %cst_9 : f32 to vector<64x1xf32>
    %26 = arith.mulf %25, %24 : vector<64x1xf32>
    %cst_10 = arith.constant 4.000000e+00 : f32
    %27 = vector.broadcast %cst_10 : f32 to vector<64x1xf32>
    %28 = arith.mulf %27, %12 : vector<64x1xf32>
    %29 = arith.subf %28, %23 : vector<64x1xf32>
    %cst_11 = arith.constant 2.500000e-02 : f32
    %30 = vector.broadcast %cst_11 : f32 to vector<64x1xf32>
    %31 = arith.mulf %30, %29 : vector<64x1xf32>
    %32 = arith.addf %26, %31 : vector<64x1xf32>
    %33 = tpu.iota {dimensions = array<i32: 0>} : vector<64x1xi32>
    %c1_i32 = arith.constant 1 : i32
    %34 = arith.muli %arg0, %c1_i32 : i32
    %35 = arith.addi %34, %arg1 : i32
    %c64_i32 = arith.constant 64 : i32
    %36 = arith.muli %35, %c64_i32 : i32
    %37 = vector.broadcast %36 : i32 to vector<64x1xi32>
    %38 = arith.addi %37, %33 : vector<64x1xi32>
    %c0_12 = arith.constant 0 : index
    %c0_13 = arith.constant 0 : index
    %39 = vector.load %arg5[%c0_12, %c0_13] : memref<64x1xf32, #tpu.memory_space<vmem>>, vector<64x1xf32>
    %c64_i32_14 = arith.constant 64 : i32
    %40 = vector.broadcast %c64_i32_14 : i32 to vector<64x1xi32>
    %41 = arith.cmpi slt, %38, %40 : vector<64x1xi32>
    %cst_15 = arith.constant 0.000000e+00 : f32
    %42 = vector.broadcast %cst_15 : f32 to vector<64x1xf32>
    %43 = arith.select %41, %32, %42 : vector<64x1xi1>, vector<64x1xf32>
    %44 = arith.addf %39, %43 : vector<64x1xf32>
    %c0_16 = arith.constant 0 : index
    %c0_17 = arith.constant 0 : index
    %45 = vector.load %arg5[%c0_16, %c0_17] : memref<64x1xf32, #tpu.memory_space<vmem>>, vector<64x1xf32>
    tpu.vector_store %arg5[%c0_16, %c0_17], %44 {strides = array<i32>} : memref<64x1xf32, #tpu.memory_space<vmem>>, vector<64x1xf32>,
    %c0_i32_18 = arith.constant 0 : i32
    %46 = arith.cmpi eq, %arg1, %c0_i32_18 : i32
    %47 = arith.extui %46 : i1 to i32
    %c0_i32_19 = arith.constant 0 : i32
    %48 = arith.cmpi ne, %47, %c0_i32_19 : i32
    scf.if %48 {
      %c0_20 = arith.constant 0 : index
      %c0_21 = arith.constant 0 : index
      %49 = vector.load %arg5[%c0_20, %c0_21] : memref<64x1xf32, #tpu.memory_space<vmem>>, vector<64x1xf32>
      %cst_22 = arith.constant dense<0.000000e+00> : vector<1xf32>
      %50 = vector.multi_reduction <add>, %49, %cst_22 [0] : vector<64x1xf32> to vector<1xf32>
      %51 = vector.shape_cast %50 : vector<1xf32> to vector<1x1xf32>
      %52 = vector.shape_cast %51 : vector<1x1xf32> to vector<1x1xf32>
      %53 = vector.broadcast %52 : vector<1x1xf32> to vector<8x128xf32>
      %c0_23 = arith.constant 0 : index
      %c0_24 = arith.constant 0 : index
      %54 = vector.load %arg4[%c0_23, %c0_24] : memref<8x128xf32, #tpu.memory_space<vmem>>, vector<8x128xf32>
      tpu.vector_store %arg4[%c0_23, %c0_24], %53 {strides = array<i32>} : memref<8x128xf32, #tpu.memory_space<vmem>>, vector<8x128xf32>,
    } else {
    }
    return
  }
  func.func @transform_0(%arg0: i32, %arg1: i32) -> (i32, i32) {
    %c1_i32 = arith.constant 1 : i32
    %0 = arith.muli %arg0, %c1_i32 : i32
    %1 = arith.addi %0, %arg1 : i32
    %c0_i32 = arith.constant 0 : i32
    %c0_i32_0 = arith.constant 0 : i32
    return %1, %c0_i32 : i32, i32
  }
  func.func @transform_1(%arg0: i32, %arg1: i32) -> (i32, i32) {
    %c1_i32 = arith.constant 1 : i32
    %0 = arith.muli %arg0, %c1_i32 : i32
    %1 = arith.addi %0, %arg1 : i32
    %c0_i32 = arith.constant 0 : i32
    %c0_i32_0 = arith.constant 0 : i32
    return %1, %c0_i32 : i32, i32
  }
  func.func @transform_2(%arg0: i32, %arg1: i32) -> (i32, i32) {
    %c0_i32 = arith.constant 0 : i32
    %c0_i32_0 = arith.constant 0 : i32
    return %arg0, %c0_i32 : i32, i32
  }
}

</mosaic_0001>

<bundles_post_ra>
// kernel: tpu_custom_call.1
= control target key start
LH: loop header
LB: loop body
LE: loop exit
PB: predicated region body
PF: predicated region fallthrough
CT: control target
= control target key end

     0   :  { %7 = vsyncpa [#allocation4], 0  ;;  %s706_s0 = inlined_call_operand.hbm [shape: f32[64,4], index: 0, kind: input, shape index: {}]   ;;  %s707_s1 = inlined_call_operand.hbm [shape: s32[64,1], index: 1, kind: input, shape index: {}]   ;;  %s708_s2 = inlined_call_operand.hbm [shape: f32[8,128], index: 2, kind: output, shape index: {}]  }
   0x1   :  { %8 = vsyncpa [#allocation7], 0 }
   0x2   :  { %9 = vsyncpa [#allocation5], 0  ;;  %s544_s9 = smov [#allocation3]   ;;  %s472_s13 = scalar_lea.hbm %s706_s0, 1024 }
   0x3   :  { %s19_s10 = sshll.u32 %s544_s9, 4  ;;  %p473_p0 = scmp.ne.s32.totalorder %s706_s0, %s472_s13  ;;  %s20_s10 = int_to_ptr.vmem [resolvable:$true] %s19_s10 }
   0x4   :  { %p476_p1 = scmp.lt.u32.totalorder %s472_s13, %s706_s0 }
   0x6   :  { %p478_p2 = pnand %p476_p1, %p473_p0 }
   0x8   :  { %481 = shalt.err (!%p478_p2)
}
   0x9   :  { %s482_s18 = scalar_lea.vmem %s20_s10, 1024  ;;  %p487_p4 = scmp.lt.s32.totalorder %s20_s10, %s20_s10 }
   0xa   :  { %p483_p3 = scmp.ne.s32.totalorder %s20_s10, %s482_s18  ;;  %p488_p5 = scmp.lt.s32.totalorder %s482_s18, %s482_s18 }
   0xc   :  { %p489_p6 = por %p488_p5, %p487_p4 }
   0xe   :  { %p490_p7 = pnand %p489_p6, %p483_p3 }
  0x10   :  { %493 = shalt.err (!%p490_p7)
}
  0x11   :  { %s545_s19 = smov 128   ;;  %s546_s20 = smov 8  }
  0x12   :  { %25 = dma.hbm_to_vmem [thread:$0]  %s706_s0, 1024, %s20_s10, [#allocation4], %s545_s19, %s545_s19, %s546_s20  }
  0x13   :  { %s547_s23 = smov [#allocation6]   ;;  %s494_s27 = scalar_lea.hbm %s707_s1, 1024 }
  0x14   :  { %s35_s24 = sshll.u32 %s547_s23, 4  ;;  %p495_p8 = scmp.ne.s32.totalorder %s707_s1, %s494_s27  ;;  %s36_s24 = int_to_ptr.vmem [resolvable:$true] %s35_s24 }
  0x15   :  { %p498_p9 = scmp.lt.u32.totalorder %s494_s27, %s707_s1 }
  0x17   :  { %p500_p10 = pnand %p498_p9, %p495_p8 }
  0x19   :  { %503 = shalt.err (!%p500_p10)
}
  0x1a   :  { %s504_s4 = scalar_lea.vmem %s36_s24, 1024  ;;  %p509_p12 = scmp.lt.s32.totalorder %s36_s24, %s36_s24 }
  0x1b   :  { %p505_p11 = scmp.ne.s32.totalorder %s36_s24, %s504_s4  ;;  %p510_p13 = scmp.lt.s32.totalorder %s504_s4, %s504_s4 }
  0x1d   :  { %p511_p0 = por %p510_p13, %p509_p12 }
  0x1f   :  { %p512_p1 = pnand %p511_p0, %p505_p11 }
  0x21   :  { %515 = shalt.err (!%p512_p1)
}
  0x22   :  { %41 = dma.hbm_to_vmem [thread:$0]  %s707_s1, 1024, %s36_s24, [#allocation7], %s545_s19, %s545_s19, %s546_s20  }
  0x23   :  { %538 = dma.done.wait [#allocation4], 1024  }
  0x24   :  { %539 = vsyncadd [#allocation4], 4294966272 }
  0x25   :  { %540 = dma.done.wait [#allocation7], 1024  }
  0x26   :  { %541 = vsyncadd [#allocation7], 4294966272  ;;  %v548_v0 = vmov 0   ;;  %vm81_vm0 = vcmask 31744   ;;  %v67_v1 = vld [vmem:[#allocation3 + $0x10] sm:$0xff]  ;;  %v65_v2 = vld [vmem:[#allocation3] sm:$0xff]  ;;  %v170_v37 = vlaneseq }
  0x27   :  { %439 = vset.pattern.permute.xlu1 %v548_v0  ;;  %438 = vset.pattern.permute.xlu0 %v548_v0  ;;  %v68_v3 = vld [vmem:[#allocation3 + $0x18] sm:$0xff]  ;;  %v88_v4 = vsel %vm81_vm0, %v67_v1, -inf  ;;  %v82_v5 = vsel %vm81_vm0, %v65_v2, -inf  ;;  %v66_v6 = vld [vmem:[#allocation3 + $0x8] sm:$0xff]  ;;  %v69_v10 = vld [vmem:[#allocation3 + $0x20] sm:$0xff]  ;;  %vm56_vm4 = vcmask 7168  }
  0x28   :  { %89 = vmax.xlane.f32.xlu1 %v88_v4  ;;  %83 = vmax.xlane.f32.xlu0 %v82_v5  ;;  %v91_v7 = vsel %vm81_vm0, %v68_v3, -inf  ;;  %v85_v8 = vsel %vm81_vm0, %v66_v6, -inf  ;;  %v70_v9 = vld [vmem:[#allocation3 + $0x28] sm:$0xff]  ;;  %v94_v12 = vsel %vm81_vm0, %v69_v10, -inf  ;;  %v72_v13 = vld [vmem:[#allocation3 + $0x38] sm:$0xff]  ;;  %v596_v14 = vld [vmem:[#allocation3 + $0x30] sm:$0xff] }
  0x29   :  { %v97_v11 = vsel %vm81_vm0, %v70_v9, -inf  ;;  %v103_v15 = vsel %vm81_vm0, %v72_v13, -inf  ;;  %v100_v16 = vsel %vm81_vm0, %v596_v14, -inf  ;;  %v74_v17 = vld [vmem:[#allocation6 + $0x8] sm:$0xff]  ;;  %v75_v18 = vld [vmem:[#allocation6 + $0x10] sm:$0xff]  ;;  %v73_v19 = vld [vmem:[#allocation6] sm:$0xff] }
  0x2a   :  { %v76_v20 = vld [vmem:[#allocation6 + $0x18] sm:$0xff]  ;;  %v77_v21 = vld [vmem:[#allocation6 + $0x20] sm:$0xff]  ;;  %v78_v22 = vld [vmem:[#allocation6 + $0x28] sm:$0xff]  ;;  %v609_v43 = vand.u32 127, %v170_v37  ;;  %s550_s1 = smov [#allocation8]  }
  0x2b   :  { %v79_v23 = vld [vmem:[#allocation6 + $0x30] sm:$0xff]  ;;  %v80_v24 = vld [vmem:[#allocation6 + $0x38] sm:$0xff]  ;;  %s421_s6 = sshll.u32 %s550_s1, 4  ;;  %s422_s6 = int_to_ptr.vmem [resolvable:$true] %s421_s6 }
  0x2c   :  { %92 = vmax.xlane.f32.xlu1 %v91_v7  ;;  %86 = vmax.xlane.f32.xlu0 %v85_v8  ;;  %s516_s7 = scalar_lea.vmem %s422_s6, 128  ;;  %p521_p3 = scmp.lt.s32.totalorder %s422_s6, %s422_s6 }
  0x2d   :  { %p517_p2 = scmp.ne.s32.totalorder %s422_s6, %s516_s7  ;;  %p522_p4 = scmp.lt.s32.totalorder %s516_s7, %s516_s7 }
  0x2f   :  { %p523_p5 = por %p522_p4, %p521_p3 }
  0x30   :  { %98 = vmax.xlane.f32.xlu1 %v97_v11  ;;  %95 = vmax.xlane.f32.xlu0 %v94_v12 }
  0x31   :  { %p524_p6 = pnand %p523_p5, %p517_p2 }
  0x34   :  { %104 = vmax.xlane.f32.xlu1 %v103_v15  ;;  %101 = vmax.xlane.f32.xlu0 %v100_v16 }
  0x45   :  { %176 = vperm.xlu1 %439, %v74_v17  }
  0x49   :  { %179 = vperm.xlu1 %439, %v75_v18  }
  0x4a   :  { %173 = vperm.xlu0 %438, %v73_v19  }
  0x4d   :  { %182 = vperm.xlu1 %439, %v76_v20  }
  0x51   :  { %185 = vperm.xlu1 %439, %v77_v21  }
  0x55   :  { %188 = vperm.xlu1 %439, %v78_v22   ;;  %v549_v22 = vmov 0.0  }
  0x56   :  { %57 = vst.msk [vmem:[#allocation2] sm:$0xff] %vm56_vm4, %v549_v22  ;;  %58 = vst.msk [vmem:[#allocation2 + $0x8] sm:$0xff] %vm56_vm4, %v549_v22 }
  0x57   :  { %59 = vst.msk [vmem:[#allocation2 + $0x10] sm:$0xff] %vm56_vm4, %v549_v22  ;;  %60 = vst.msk [vmem:[#allocation2 + $0x18] sm:$0xff] %vm56_vm4, %v549_v22 }
  0x58   :  { %61 = vst.msk [vmem:[#allocation2 + $0x20] sm:$0xff] %vm56_vm4, %v549_v22  ;;  %62 = vst.msk [vmem:[#allocation2 + $0x28] sm:$0xff] %vm56_vm4, %v549_v22 }
  0x59   :  { %191 = vperm.xlu1 %439, %v79_v23   ;;  %63 = vst.msk [vmem:[#allocation2 + $0x30] sm:$0xff] %vm56_vm4, %v549_v22  ;;  %64 = vst.msk [vmem:[#allocation2 + $0x38] sm:$0xff] %vm56_vm4, %v549_v22 }
  0x5d   :  { %194 = vperm.xlu1 %439, %v80_v24  }
  0xb5   :  { %v90_v25 = vpop.xlane.xlu1 %89  ;;  %v84_v26 = vpop.xlane.xlu0 %83 }
  0xb6   :  { %v106_v27 = vsub.f32 %v65_v2, %v84_v26  ;;  %v108_v32 = vsub.f32 %v67_v1, %v90_v25 }
  0xb8   :  { %v244_v28 = vsel %vm81_vm0, %v106_v27, 0.0  ;;  %v114_v34 = vmul.f32 1.442695, %v106_v27  ;;  %v250_v39 = vsel %vm81_vm0, %v108_v32, 0.0  ;;  %v118_v50 = vmul.f32 1.442695, %v108_v32 }
  0xb9   :  { %v93_v29 = vpop.xlane.xlu1 %92  ;;  %245 = vadd.xlane.f32.xlu0 %v244_v28  ;;  %v87_v30 = vpop.xlane.xlu0 %86 }
  0xba   :  { %v107_v31 = vsub.f32 %v66_v6, %v87_v30  ;;  %v603_v35 = vsub.f32 %v68_v3, %v93_v29  ;;  %440 = vpow2.f32 %v114_v34 }
  0xbc   :  { %v247_v33 = vsel %vm81_vm0, %v107_v31, 0.0  ;;  %v120_v40 = vmul.f32 1.442695, %v603_v35  ;;  %v116_v44 = vmul.f32 1.442695, %v107_v31  ;;  %v253_v15 = vsel %vm81_vm0, %v603_v35, 0.0 }
  0xbd   :  { %v99_v36 = vpop.xlane.xlu1 %98  ;;  %248 = vadd.xlane.f32.xlu1 %v247_v33  ;;  %v96_v38 = vpop.xlane.xlu0 %95 }
  0xbe   :  { %v607_v41 = vsub.f32 %v70_v9, %v99_v36  ;;  %442 = vpow2.f32 %v120_v40  ;;  %v613_v49 = vsub.f32 %v69_v10, %v96_v38 }
  0xbf   :  { %444 = vpow2.f32 %v116_v44 }
  0xc0   :  { %v124_v45 = vmul.f32 1.442695, %v607_v41  ;;  %v122_v59 = vmul.f32 1.442695, %v613_v49  ;;  %v256_v25 = vsel %vm81_vm0, %v613_v49, 0.0  ;;  %v259_v30 = vsel %vm81_vm0, %v607_v41, 0.0 }
  0xc1   :  { %v105_v42 = vpop.xlane.xlu1 %104  ;;  %251 = vadd.xlane.f32.xlu1 %v250_v39  ;;  %v102_v46 = vpop.xlane.xlu0 %101 }
  0xc2   :  { %446 = vpow2.f32 %v124_v45  ;;  %v615_v51 = vsub.f32 %v72_v13, %v105_v42  ;;  %v627_v62 = vsub.f32 %v596_v14, %v102_v46 }
  0xc3   :  { %448 = vpow2.f32 %v118_v50 }
  0xc4   :  { %v441_v58 = vpop.eup %440  ;;  %v128_v61 = vmul.f32 1.442695, %v615_v51  ;;  %450 = vpow2.f32 %v122_v59  ;;  %v126_v4 = vmul.f32 1.442695, %v627_v62  ;;  %v262_v36 = vsel %vm81_vm0, %v627_v62, 0.0 }
  0xc5   :  { %v177_v47 = vpop.permute.xlu1 %176  ;;  %v130_v0 = vsel %vm81_vm0, %v441_v58, 0.0  ;;  %v265_v39 = vsel %vm81_vm0, %v615_v51, 0.0 }
  0xc6   :  { %v197_v48 = vsub.s32 %v609_v43, %v177_v47  ;;  %452 = vpow2.f32 %v128_v61 }
  0xc7   :  { %454 = vpow2.f32 %v126_v4 }
  0xc8   :  { %vm205_vm1 = vcmp.eq.s32.totalorder %v197_v48, 0  ;;  %v443_v2 = vpop.eup %442 }
  0xc9   :  { %v180_v52 = vpop.permute.xlu1 %179  ;;  %v174_v53 = vpop.permute.xlu0 %173  ;;  %v213_v54 = vsel %vm205_vm1, %v107_v31, 0.0  ;;  %v139_v7 = vsel %vm81_vm0, %v443_v2, 0.0 }
  0xca   :  { %v198_v55 = vsub.s32 %v609_v43, %v180_v52  ;;  %v196_v56 = vsub.s32 %v609_v43, %v174_v53  ;;  %v223_v57 = vsel %vm81_vm0, %v213_v54, 0.0  ;;  %v445_v6 = vpop.eup %444 }
  0xcb   :  { %224 = vadd.xlane.f32.xlu1 %v223_v57  ;;  %v133_v11 = vsel %vm81_vm0, %v445_v6, 0.0  ;;  %v336_v6 = vld [vmem:[#allocation2] sm:$0xff] }
  0xcc   :  { %vm621_vm2 = vcmp.eq.s32.totalorder %v198_v55, 0  ;;  %vm204_vm3 = vcmp.eq.s32.totalorder %v196_v56, 0  ;;  %v447_v9 = vpop.eup %446 }
  0xcd   :  { %v212_v63 = vsel %vm204_vm3, %v106_v27, 0.0  ;;  %v214_v3 = vsel %vm621_vm2, %v108_v32, 0.0  ;;  %v183_v5 = vpop.permute.xlu1 %182  ;;  %v145_v10 = vsel %vm81_vm0, %v447_v9, 0.0  ;;  %v449_v12 = vpop.eup %448 }
  0xce   :  { %v220_v1 = vsel %vm81_vm0, %v212_v63, 0.0  ;;  %v226_v8 = vsel %vm81_vm0, %v214_v3, 0.0  ;;  %v451_v14 = vpop.eup %450  ;;  %v136_v16 = vsel %vm81_vm0, %v449_v12, 0.0  ;;  %v199_v18 = vsub.s32 %v609_v43, %v183_v5 }
  0xcf   :  { %131 = vadd.xlane.f32.xlu1 %v130_v0  ;;  %221 = vadd.xlane.f32.xlu0 %v220_v1  ;;  %v142_v21 = vsel %vm81_vm0, %v451_v14, 0.0 }
  0xd0   :  { %v453_v17 = vpop.eup %452  ;;  %vm207_vm5 = vcmp.eq.s32.totalorder %v199_v18, 0 }
  0xd1   :  { %v186_v13 = vpop.permute.xlu1 %185  ;;  %v151_v20 = vsel %vm81_vm0, %v453_v17, 0.0  ;;  %v455_v23 = vpop.eup %454  ;;  %v215_v28 = vsel %vm207_vm5, %v603_v35, 0.0 }
  0xd2   :  { %v200_v24 = vsub.s32 %v609_v43, %v186_v13  ;;  %v148_v26 = vsel %vm81_vm0, %v455_v23, 0.0  ;;  %v229_v31 = vsel %vm81_vm0, %v215_v28, 0.0 }
  0xd3   :  { %140 = vadd.xlane.f32.xlu1 %v139_v7  ;;  %227 = vadd.xlane.f32.xlu0 %v226_v8 }
  0xd4   :  { %vm208_vm6 = vcmp.eq.s32.totalorder %v200_v24, 0 }
  0xd5   :  { %v189_v19 = vpop.permute.xlu1 %188  ;;  %v216_v32 = vsel %vm208_vm6, %v613_v49, 0.0 }
  0xd6   :  { %v201_v29 = vsub.s32 %v609_v43, %v189_v19  ;;  %v232_v35 = vsel %vm81_vm0, %v216_v32, 0.0  ;;  %v337_v32 = vld [vmem:[#allocation2 + $0x8] sm:$0xff] }
  0xd7   :  { %146 = vadd.xlane.f32.xlu1 %v145_v10  ;;  %134 = vadd.xlane.f32.xlu0 %v133_v11 }
  0xd8   :  { %vm209_vm7 = vcmp.eq.s32.totalorder %v201_v29, 0 }
  0xd9   :  { %v192_v27 = vpop.permute.xlu1 %191  ;;  %v217_v37 = vsel %vm209_vm7, %v607_v41, 0.0 }
  0xda   :  { %v202_v33 = vsub.s32 %v609_v43, %v192_v27  ;;  %v235_v40 = vsel %vm81_vm0, %v217_v37, 0.0 }
  0xdb   :  { %254 = vadd.xlane.f32.xlu1 %v253_v15  ;;  %137 = vadd.xlane.f32.xlu0 %v136_v16 }
  0xdc   :  { %vm210_vm8 = vcmp.eq.s32.totalorder %v202_v33, 0 }
  0xdd   :  { %v195_v34 = vpop.permute.xlu1 %194  ;;  %v218_v42 = vsel %vm210_vm8, %v627_v62, 0.0 }
  0xde   :  { %v203_v38 = vsub.s32 %v609_v43, %v195_v34  ;;  %v238_v44 = vsel %vm81_vm0, %v218_v42, 0.0  ;;  %v339_v34 = vld [vmem:[#allocation2 + $0x18] sm:$0xff] }
  0xdf   :  { %152 = vadd.xlane.f32.xlu1 %v151_v20  ;;  %143 = vadd.xlane.f32.xlu0 %v142_v21 }
  0xe0   :  { %vm211_vm9 = vcmp.eq.s32.totalorder %v203_v38, 0 }
  0xe1   :  { %v219_v45 = vsel %vm211_vm9, %v615_v51, 0.0 }
  0xe2   :  { %v241_v41 = vsel %vm81_vm0, %v219_v45, 0.0 }
  0xe3   :  { %257 = vadd.xlane.f32.xlu1 %v256_v25  ;;  %149 = vadd.xlane.f32.xlu0 %v148_v26 }
  0xe7   :  { %260 = vadd.xlane.f32.xlu1 %v259_v30  ;;  %230 = vadd.xlane.f32.xlu0 %v229_v31 }
  0xeb   :  { %263 = vadd.xlane.f32.xlu1 %v262_v36  ;;  %233 = vadd.xlane.f32.xlu0 %v232_v35 }
  0xef   :  { %266 = vadd.xlane.f32.xlu1 %v265_v39  ;;  %236 = vadd.xlane.f32.xlu0 %v235_v40 }
  0xf3   :  { %239 = vadd.xlane.f32.xlu0 %v238_v44 }
  0xf7   :  { %242 = vadd.xlane.f32.xlu0 %v241_v41 }
 0x146   :  { %v246_v47 = vpop.xlane.xlu0 %245 }
 0x14a   :  { %v249_v46 = vpop.xlane.xlu1 %248 }
 0x14e   :  { %v675_v43 = vpop.xlane.xlu1 %251 }
 0x158   :  { %v225_v48 = vpop.xlane.xlu1 %224 }
 0x15c   :  { %v132_v49 = vpop.xlane.xlu1 %131  ;;  %v222_v50 = vpop.xlane.xlu0 %221 }
 0x15d   :  { %456 = vlog2.f32 %v132_v49 }
 0x160   :  { %v141_v52 = vpop.xlane.xlu1 %140  ;;  %v228_v53 = vpop.xlane.xlu0 %227 }
 0x161   :  { %458 = vlog2.f32 %v141_v52 }
 0x164   :  { %v147_v54 = vpop.xlane.xlu1 %146  ;;  %v135_v55 = vpop.xlane.xlu0 %134 }
 0x165   :  { %460 = vlog2.f32 %v147_v54 }
 0x166   :  { %462 = vlog2.f32 %v135_v55 }
 0x167   :  { %v457_v56 = vpop.eup %456 }
 0x168   :  { %v155_v51 = vmul.f32 0.6931472, %v457_v56  ;;  %v255_v57 = vpop.xlane.xlu1 %254  ;;  %v138_v58 = vpop.xlane.xlu0 %137 }
 0x169   :  { %464 = vlog2.f32 %v138_v58 }
 0x16a   :  { %v284_v59 = vmul.f32 4.0, %v155_v51  ;;  %v268_v60 = vsub.f32 %v155_v51, %v222_v50 }
 0x16b   :  { %v459_v61 = vpop.eup %458 }
 0x16c   :  { %v292_v62 = vsub.f32 %v284_v59, %v246_v47  ;;  %v161_v63 = vmul.f32 0.6931472, %v459_v61  ;;  %v153_v0 = vpop.xlane.xlu1 %152  ;;  %v144_v1 = vpop.xlane.xlu0 %143  ;;  %v276_v3 = vmul.f32 0.9, %v268_v60  ;;  %v338_v47 = vld [vmem:[#allocation2 + $0x10] sm:$0xff] }
 0x16d   :  { %466 = vlog2.f32 %v153_v0 }
 0x16e   :  { %v300_v2 = vmul.f32 0.025, %v292_v62  ;;  %v287_v4 = vmul.f32 4.0, %v161_v63  ;;  %468 = vlog2.f32 %v144_v1  ;;  %v341_v1 = vld [vmem:[#allocation2 + $0x28] sm:$0xff] }
 0x16f   :  { %v461_v5 = vpop.eup %460 }
 0x170   :  { %v463_v7 = vpop.eup %462  ;;  %v308_v8 = vadd.f32 %v300_v2, %v276_v3  ;;  %v258_v9 = vpop.xlane.xlu1 %257  ;;  %v165_v13 = vmul.f32 0.6931472, %v461_v5  ;;  %v295_v14 = vsub.f32 %v287_v4, %v255_v57 }
 0x171   :  { %v150_v10 = vpop.xlane.xlu0 %149  ;;  %v157_v11 = vmul.f32 0.6931472, %v463_v7 }
 0x172   :  { %470 = vlog2.f32 %v150_v10  ;;  %v360_v12 = vadd.f32 %v336_v6, %v308_v8  ;;  %v303_v23 = vmul.f32 0.025, %v295_v14  ;;  %v289_v26 = vmul.f32 4.0, %v165_v13 }
 0x173   :  { %v465_v15 = vpop.eup %464  ;;  %v269_v16 = vsub.f32 %v157_v11, %v225_v48  ;;  %v285_v17 = vmul.f32 4.0, %v157_v11 }
 0x174   :  { %369 = vst.msk [vmem:[#allocation2] sm:$0xff] %vm56_vm4, %v360_v12  ;;  %v159_v18 = vmul.f32 0.6931472, %v465_v15  ;;  %v261_v19 = vpop.xlane.xlu1 %260  ;;  %v342_v12 = vld [vmem:[#allocation2 + $0x30] sm:$0xff] }
 0x175   :  { %v231_v20 = vpop.xlane.xlu0 %230  ;;  %v293_v21 = vsub.f32 %v285_v17, %v249_v46  ;;  %v277_v28 = vmul.f32 0.9, %v269_v16  ;;  %v297_v44 = vsub.f32 %v289_v26, %v261_v19 }
 0x176   :  { %v271_v22 = vsub.f32 %v161_v63, %v231_v20  ;;  %v270_v24 = vsub.f32 %v159_v18, %v228_v53  ;;  %v286_v25 = vmul.f32 4.0, %v159_v18  ;;  %v340_v63 = vld [vmem:[#allocation2 + $0x20] sm:$0xff] }
 0x177   :  { %v467_v27 = vpop.eup %466  ;;  %v301_v29 = vmul.f32 0.025, %v293_v21  ;;  %v305_v51 = vmul.f32 0.025, %v297_v44 }
 0x178   :  { %v279_v30 = vmul.f32 0.9, %v271_v22  ;;  %v469_v31 = vpop.eup %468  ;;  %v294_v33 = vsub.f32 %v286_v25, %v675_v43  ;;  %v278_v39 = vmul.f32 0.9, %v270_v24  ;;  %v169_v42 = vmul.f32 0.6931472, %v467_v27  ;;  %v264_v45 = vpop.xlane.xlu1 %263 }
 0x179   :  { %v234_v36 = vpop.xlane.xlu0 %233  ;;  %v309_v35 = vadd.f32 %v301_v29, %v277_v28  ;;  %v163_v37 = vmul.f32 0.6931472, %v469_v31  ;;  %v343_v25 = vld [vmem:[#allocation2 + $0x38] sm:$0xff] }
 0x17a   :  { %v311_v38 = vadd.f32 %v303_v23, %v279_v30  ;;  %v302_v40 = vmul.f32 0.025, %v294_v33  ;;  %v291_v58 = vmul.f32 4.0, %v169_v42 }
 0x17b   :  { %v361_v46 = vadd.f32 %v337_v32, %v309_v35  ;;  %v288_v48 = vmul.f32 4.0, %v163_v37  ;;  %v272_v50 = vsub.f32 %v163_v37, %v234_v36  ;;  %v380_v11 = vld [vmem:[#allocation2] sm:$0xff] }
 0x17c   :  { %v471_v41 = vpop.eup %470  ;;  %v363_v49 = vadd.f32 %v339_v34, %v311_v38  ;;  %v310_v52 = vadd.f32 %v302_v40, %v278_v39  ;;  %v267_v0 = vpop.xlane.xlu1 %266  ;;  %v388_v18 = vsel %vm56_vm4, %v380_v11, 0.0 }
 0x17d   :  { %v167_v53 = vmul.f32 0.6931472, %v471_v41  ;;  %v237_v54 = vpop.xlane.xlu0 %236  ;;  %370 = vst.msk [vmem:[#allocation2 + $0x8] sm:$0xff] %vm56_vm4, %v361_v46  ;;  %v296_v43 = vsub.f32 %v288_v48, %v258_v9  ;;  %v280_v60 = vmul.f32 0.9, %v272_v50  ;;  %v299_v8 = vsub.f32 %v291_v58, %v267_v0 }
 0x17e   :  { %372 = vst.msk [vmem:[#allocation2 + $0x18] sm:$0xff] %vm56_vm4, %v363_v49  ;;  %v273_v55 = vsub.f32 %v165_v13, %v237_v54  ;;  %v362_v56 = vadd.f32 %v338_v47, %v310_v52 }
 0x17f   :  { %v290_v57 = vmul.f32 4.0, %v167_v53  ;;  %v304_v59 = vmul.f32 0.025, %v296_v43  ;;  %v307_v19 = vmul.f32 0.025, %v299_v8 }
 0x180   :  { %v281_v61 = vmul.f32 0.9, %v273_v55  ;;  %371 = vst.msk [vmem:[#allocation2 + $0x10] sm:$0xff] %vm56_vm4, %v362_v56 }
 0x181   :  { %v298_v62 = vsub.f32 %v290_v57, %v264_v45  ;;  %v240_v2 = vpop.xlane.xlu0 %239  ;;  %v312_v3 = vadd.f32 %v304_v59, %v280_v60 }
 0x182   :  { %v313_v4 = vadd.f32 %v305_v51, %v281_v61  ;;  %v274_v5 = vsub.f32 %v167_v53, %v240_v2 }
 0x183   :  { %v306_v6 = vmul.f32 0.025, %v298_v62  ;;  %v364_v7 = vadd.f32 %v340_v63, %v312_v3 }
 0x184   :  { %v365_v9 = vadd.f32 %v341_v1, %v313_v4  ;;  %v282_v10 = vmul.f32 0.9, %v274_v5  ;;  %v381_v14 = vld [vmem:[#allocation2 + $0x8] sm:$0xff] }
 0x185   :  { %v243_v13 = vpop.xlane.xlu0 %242  ;;  %373 = vst.msk [vmem:[#allocation2 + $0x20] sm:$0xff] %vm56_vm4, %v364_v7  ;;  %v389_v17 = vsel %vm56_vm4, %v381_v14, 0.0  ;;  %v383_v23 = vld [vmem:[#allocation2 + $0x18] sm:$0xff] }
 0x186   :  { %374 = vst.msk [vmem:[#allocation2 + $0x28] sm:$0xff] %vm56_vm4, %v365_v9  ;;  %v314_v15 = vadd.f32 %v306_v6, %v282_v10  ;;  %v275_v16 = vsub.f32 %v169_v42, %v243_v13  ;;  %v390_v24 = vadd.f32 %v389_v17, %v388_v18  ;;  %v393_v29 = vsel %vm56_vm4, %v383_v23, 0.0 }
 0x187   :  { %v382_v22 = vld [vmem:[#allocation2 + $0x10] sm:$0xff] }
 0x188   :  { %v366_v20 = vadd.f32 %v342_v12, %v314_v15  ;;  %v283_v21 = vmul.f32 0.9, %v275_v16  ;;  %v391_v26 = vsel %vm56_vm4, %v382_v22, 0.0 }
 0x189   :  { %v392_v28 = vadd.f32 %v391_v26, %v390_v24 }
 0x18a   :  { %375 = vst.msk [vmem:[#allocation2 + $0x30] sm:$0xff] %vm56_vm4, %v366_v20  ;;  %v315_v27 = vadd.f32 %v307_v19, %v283_v21 }
 0x18b   :  { %v394_v31 = vadd.f32 %v393_v29, %v392_v28 }
 0x18c   :  { %v367_v30 = vadd.f32 %v343_v25, %v315_v27  ;;  %v384_v32 = vld [vmem:[#allocation2 + $0x20] sm:$0xff] }
 0x18d   :  { %v385_v33 = vld [vmem:[#allocation2 + $0x28] sm:$0xff]  ;;  %v395_v34 = vsel %vm56_vm4, %v384_v32, 0.0 }
 0x18e   :  { %376 = vst.msk [vmem:[#allocation2 + $0x38] sm:$0xff] %vm56_vm4, %v367_v30  ;;  %v397_v36 = vsel %vm56_vm4, %v385_v33, 0.0  ;;  %v396_v35 = vadd.f32 %v395_v34, %v394_v31 }
 0x190   :  { %v398_v38 = vadd.f32 %v397_v36, %v396_v35 }
 0x191   :  { %v386_v37 = vld [vmem:[#allocation2 + $0x30] sm:$0xff] }
 0x192   :  { %v399_v39 = vsel %vm56_vm4, %v386_v37, 0.0 }
 0x193   :  { %v400_v42 = vadd.f32 %v399_v39, %v398_v38 }
 0x195   :  { %v387_v40 = vld [vmem:[#allocation2 + $0x38] sm:$0xff] }
 0x196   :  { %v401_v44 = vsel %vm56_vm4, %v387_v40, 0.0 }
 0x197   :  { %v402_v45 = vadd.f32 %v401_v44, %v400_v42 }
 0x199   :  { %v403_v41 = vrot.slane %v402_v45, 4 }
 0x19b   :  { %v404_v46 = vadd.f32 %v403_v41, %v402_v45 }
 0x19d   :  { %v405_v47 = vrot.slane %v404_v46, 2 }
 0x19f   :  { %v406_v48 = vadd.f32 %v405_v47, %v404_v46 }
 0x1a1   :  { %v407_v49 = vrot.slane %v406_v48, 1 }
 0x1a3   :  { %v408_v50 = vadd.f32 %v407_v49, %v406_v48 }
 0x1a5   :  { %411 = vperm.xlu0 %438, %v408_v50  }
 0x224   :  { %v412_v52 = vpop.permute.xlu0 %411 }
 0x225   :  { %414 = vst [vmem:[#allocation8] sm:$0xff] %v412_v52 }
 0x226   :  { %527 = shalt.err (!%p524_p6)
}
 0x227   :  { %s528_s10 = scalar_lea.hbm %s708_s2, 128 }
 0x228   :  { %p529_p7 = scmp.ne.s32.totalorder %s708_s2, %s528_s10  ;;  %p532_p8 = scmp.lt.u32.totalorder %s528_s10, %s708_s2 }
 0x22a   :  { %p534_p9 = pnand %p532_p8, %p529_p7 }
 0x22c   :  { %537 = shalt.err (!%p534_p9)
}
 0x22d   :  { %424 = dma.vmem_to_hbm [thread:$0]  %s422_s6, 128, %s708_s2, [#allocation5]  }
 0x22e   :  { %542 = dma.done.wait [#allocation5], 128  }
 0x22f   :  { %543 = vsyncadd [#allocation5], 4294967168 }
 0x230   :  { %428 = vsyncpa [#allocation4], 1 }
 0x231   :  { %429 = vsyncpa [#allocation7], 1 }
 0x232   :  { %430 = vsyncpa [#allocation5], 1 }

</bundles_post_ra>
